<compile_context>
chip_gen: v6e
topology: v6e:2x2x1
jax: 0.10.0
libtpu: 0.0.40
codegen_flags: <defaults>
</compile_context>

<pallas_src>
import jax
import jax.numpy as jnp
import numpy as np
from jax.experimental import pallas as pl

BETA = 0.9          # unused at runtime: mem starts at 0 each call, so beta*mem == 0
THRESHOLD = 1.0
LR = 0.01
NUM_LAYERS = 3
NUM_NEURONS = 128   # lane-friendly (last dim on the 128-lane axis)
BATCH = 1           # PyTorch's (1,N)-over-(N,N) broadcast in stdp_update needs B==1


def _spiking_kernel(x_ref, w_ref, spk_ref, mem_ref, wout_ref):
    # Single grid step: every array is fully resident in VMEM.
    #   x_ref    : (1, N)        input
    #   w_ref    : (L, N, N)     weights (aliased with wout_ref's HBM buffer)
    #   spk_ref  : (L, 1, N)     per-layer spikes
    #   mem_ref  : (L, 1, N)     per-layer membrane potentials
    #   wout_ref : (L, N, N)     updated weights
    L = w_ref.shape[0]
    x_in = x_ref[...]                                   # (1, N)

    for i in range(L):                                  # unrolled layer chain (L is tiny)
        # snn.Leaky with zero initial membrane + subtract reset:
        #   mem = beta*0 + x_in  (reset term is 0 on the first/only step)
        mem_val = x_in
        spike = (mem_val > THRESHOLD).astype(jnp.float32)

        mem_ref[i] = mem_val                            # (1, N)
        spk_ref[i] = spike                              # (1, N)

        # STDP: +lr*(dt>0) - lr*(dt<0) folded into one (1,N) row delta and a
        # single broadcast add over the (N,N) weight block.
        delta_t = spike - x_in
        ltp = (delta_t > 0).astype(jnp.float32)
        ltd = (delta_t < 0).astype(jnp.float32)
        delta_w = LR * (ltp - ltd)                      # (1, N)
        wout_ref[i] = w_ref[i] + delta_w                # broadcast over rows

        # next layer's input is this layer's spikes
        x_in = spike


@jax.jit
def spiking_network_forward(x, weights):
    """x: (1, N) f32; weights: (L, N, N) f32.

    Returns (spikes (L,1,N), mem (L,1,N), feedback (1,N), new_weights (L,N,N)).
    """
    L, N, _ = weights.shape
    # Guard: the STDP row-broadcast (and the PyTorch in-place broadcast it mirrors)
    # is only valid for batch == 1.
    assert x.shape == (1, N), "SpikingNetwork STDP broadcast requires batch == 1"

    spikes, mem, new_w = pl.pallas_call(
        _spiking_kernel,
        out_shape=(
            jax.ShapeDtypeStruct((L, 1, N), jnp.float32),   # spikes
            jax.ShapeDtypeStruct((L, 1, N), jnp.float32),   # mem
            jax.ShapeDtypeStruct((L, N, N), jnp.float32),   # updated weights
        ),
        # In-place weight update: weights (input 1) aliases new_w (output 2).
        input_output_aliases={1: 2},
    )(x, weights)

    feedback = spikes[-1]
    return spikes, mem, feedback, new_w


def _reference(x, weights):
    """Pure-numpy reference matching the PyTorch forward."""
    x = np.asarray(x)
    weights = np.asarray(weights)
    spikes, mems, new_w = [], [], []
    x_in = x
    for i in range(weights.shape[0]):
        mem_val = x_in                                     # beta*0 + x_in
        spike = (mem_val > THRESHOLD).astype(np.float32)
        delta_t = spike - x_in
        w = weights[i] + LR * (delta_t > 0).astype(np.float32) \
                       - LR * (delta_t < 0).astype(np.float32)
        spikes.append(spike)
        mems.append(mem_val)
        new_w.append(w)
        x_in = spike
    return np.stack(spikes), np.stack(mems), spikes[-1], np.stack(new_w)


if __name__ == "__main__":
    key = jax.random.PRNGKey(0)
    kx, kw = jax.random.split(key)

    # deterministic inputs / parameters
    x = 2.0 * jax.random.normal(kx, (BATCH, NUM_NEURONS), dtype=jnp.float32)
    bound = 1.0 / np.sqrt(NUM_NEURONS)       # nn.Linear default uniform init
    weights = jax.random.uniform(
        kw, (NUM_LAYERS, NUM_NEURONS, NUM_NEURONS),
        minval=-bound, maxval=bound, dtype=jnp.float32)

    # reference first (numpy copies, independent of any buffer aliasing)
    r_spikes, r_mem, r_fb, r_w = _reference(x, weights)

    spikes, mem, feedback, new_w = jax.block_until_ready(
        spiking_network_forward(x, weights))

    assert np.allclose(np.asarray(spikes), r_spikes)
    assert np.allclose(np.asarray(mem), r_mem)
    assert np.allclose(np.asarray(feedback), r_fb)
    assert np.allclose(np.asarray(new_w), r_w, atol=1e-6)

    print("KERNEL_OK")
</pallas_src>

<mosaic_0001>
module attributes {stable_mosaic.version = 11 : i64} {
  func.func @_spiking_kernel(%arg0: memref<1x128xf32, #tpu.memory_space<vmem>>, %arg1: memref<3x128x128xf32, #tpu.memory_space<vmem>>, %arg2: memref<3x1x128xf32, #tpu.memory_space<vmem>>, %arg3: memref<3x1x128xf32, #tpu.memory_space<vmem>>, %arg4: memref<3x128x128xf32, #tpu.memory_space<vmem>>) attributes {dimension_semantics = [], scalar_prefetch = 0 : i64, scratch_operands = 0 : i64, tpu.core_type = #tpu.core_type<tc>} {
    %c0 = arith.constant 0 : index
    %c0_0 = arith.constant 0 : index
    %0 = vector.load %arg0[%c0, %c0_0] : memref<1x128xf32, #tpu.memory_space<vmem>>, vector<1x128xf32>
    %cst = arith.constant 1.000000e+00 : f32
    %1 = vector.broadcast %cst : f32 to vector<1x128xf32>
    %2 = arith.cmpf ogt, %0, %1 : vector<1x128xf32>
    %3 = arith.extui %2 : vector<1x128xi1> to vector<1x128xi32>
    %4 = arith.sitofp %3 : vector<1x128xi32> to vector<1x128xf32>
    %c0_1 = arith.constant 0 : index
    %c0_2 = arith.constant 0 : index
    %c0_3 = arith.constant 0 : index
    %5 = vector.load %arg3[%c0_1, %c0_2, %c0_3] : memref<3x1x128xf32, #tpu.memory_space<vmem>>, vector<1x1x128xf32>
    %6 = vector.shape_cast %5 : vector<1x1x128xf32> to vector<1x128xf32>
    %7 = vector.shape_cast %0 : vector<1x128xf32> to vector<1x1x128xf32>
    tpu.vector_store %arg3[%c0_1, %c0_2, %c0_3], %7 {strides = array<i32>} : memref<3x1x128xf32, #tpu.memory_space<vmem>>, vector<1x1x128xf32>,
    %c0_4 = arith.constant 0 : index
    %c0_5 = arith.constant 0 : index
    %c0_6 = arith.constant 0 : index
    %8 = vector.load %arg2[%c0_4, %c0_5, %c0_6] : memref<3x1x128xf32, #tpu.memory_space<vmem>>, vector<1x1x128xf32>
    %9 = vector.shape_cast %8 : vector<1x1x128xf32> to vector<1x128xf32>
    %10 = vector.shape_cast %4 : vector<1x128xf32> to vector<1x1x128xf32>
    tpu.vector_store %arg2[%c0_4, %c0_5, %c0_6], %10 {strides = array<i32>} : memref<3x1x128xf32, #tpu.memory_space<vmem>>, vector<1x1x128xf32>,
    %11 = arith.subf %4, %0 : vector<1x128xf32>
    %cst_7 = arith.constant 0.000000e+00 : f32
    %12 = vector.broadcast %cst_7 : f32 to vector<1x128xf32>
    %13 = arith.cmpf ogt, %11, %12 : vector<1x128xf32>
    %14 = arith.extui %13 : vector<1x128xi1> to vector<1x128xi32>
    %15 = arith.sitofp %14 : vector<1x128xi32> to vector<1x128xf32>
    %cst_8 = arith.constant 0.000000e+00 : f32
    %16 = vector.broadcast %cst_8 : f32 to vector<1x128xf32>
    %17 = arith.cmpf olt, %11, %16 : vector<1x128xf32>
    %18 = arith.extui %17 : vector<1x128xi1> to vector<1x128xi32>
    %19 = arith.sitofp %18 : vector<1x128xi32> to vector<1x128xf32>
    %20 = arith.subf %15, %19 : vector<1x128xf32>
    %cst_9 = arith.constant 0.00999999977 : f32
    %21 = vector.broadcast %cst_9 : f32 to vector<1x128xf32>
    %22 = arith.mulf %21, %20 : vector<1x128xf32>
    %c0_10 = arith.constant 0 : index
    %c0_11 = arith.constant 0 : index
    %c0_12 = arith.constant 0 : index
    %23 = vector.load %arg1[%c0_10, %c0_11, %c0_12] : memref<3x128x128xf32, #tpu.memory_space<vmem>>, vector<1x128x128xf32>
    %24 = vector.shape_cast %23 : vector<1x128x128xf32> to vector<128x128xf32>
    %25 = vector.broadcast %22 : vector<1x128xf32> to vector<128x128xf32>
    %26 = arith.addf %24, %25 : vector<128x128xf32>
    %c0_13 = arith.constant 0 : index
    %c0_14 = arith.constant 0 : index
    %c0_15 = arith.constant 0 : index
    %27 = vector.load %arg4[%c0_13, %c0_14, %c0_15] : memref<3x128x128xf32, #tpu.memory_space<vmem>>, vector<1x128x128xf32>
    %28 = vector.shape_cast %27 : vector<1x128x128xf32> to vector<128x128xf32>
    %29 = vector.shape_cast %26 : vector<128x128xf32> to vector<1x128x128xf32>
    tpu.vector_store %arg4[%c0_13, %c0_14, %c0_15], %29 {strides = array<i32>} : memref<3x128x128xf32, #tpu.memory_space<vmem>>, vector<1x128x128xf32>,
    %cst_16 = arith.constant 1.000000e+00 : f32
    %30 = vector.broadcast %cst_16 : f32 to vector<1x128xf32>
    %31 = arith.cmpf ogt, %4, %30 : vector<1x128xf32>
    %32 = arith.extui %31 : vector<1x128xi1> to vector<1x128xi32>
    %33 = arith.sitofp %32 : vector<1x128xi32> to vector<1x128xf32>
    %c1 = arith.constant 1 : index
    %c0_17 = arith.constant 0 : index
    %c0_18 = arith.constant 0 : index
    %34 = vector.load %arg3[%c1, %c0_17, %c0_18] : memref<3x1x128xf32, #tpu.memory_space<vmem>>, vector<1x1x128xf32>
    %35 = vector.shape_cast %34 : vector<1x1x128xf32> to vector<1x128xf32>
    %36 = vector.shape_cast %4 : vector<1x128xf32> to vector<1x1x128xf32>
    tpu.vector_store %arg3[%c1, %c0_17, %c0_18], %36 {strides = array<i32>} : memref<3x1x128xf32, #tpu.memory_space<vmem>>, vector<1x1x128xf32>,
    %c1_19 = arith.constant 1 : index
    %c0_20 = arith.constant 0 : index
    %c0_21 = arith.constant 0 : index
    %37 = vector.load %arg2[%c1_19, %c0_20, %c0_21] : memref<3x1x128xf32, #tpu.memory_space<vmem>>, vector<1x1x128xf32>
    %38 = vector.shape_cast %37 : vector<1x1x128xf32> to vector<1x128xf32>
    %39 = vector.shape_cast %33 : vector<1x128xf32> to vector<1x1x128xf32>
    tpu.vector_store %arg2[%c1_19, %c0_20, %c0_21], %39 {strides = array<i32>} : memref<3x1x128xf32, #tpu.memory_space<vmem>>, vector<1x1x128xf32>,
    %40 = arith.subf %33, %4 : vector<1x128xf32>
    %cst_22 = arith.constant 0.000000e+00 : f32
    %41 = vector.broadcast %cst_22 : f32 to vector<1x128xf32>
    %42 = arith.cmpf ogt, %40, %41 : vector<1x128xf32>
    %43 = arith.extui %42 : vector<1x128xi1> to vector<1x128xi32>
    %44 = arith.sitofp %43 : vector<1x128xi32> to vector<1x128xf32>
    %cst_23 = arith.constant 0.000000e+00 : f32
    %45 = vector.broadcast %cst_23 : f32 to vector<1x128xf32>
    %46 = arith.cmpf olt, %40, %45 : vector<1x128xf32>
    %47 = arith.extui %46 : vector<1x128xi1> to vector<1x128xi32>
    %48 = arith.sitofp %47 : vector<1x128xi32> to vector<1x128xf32>
    %49 = arith.subf %44, %48 : vector<1x128xf32>
    %cst_24 = arith.constant 0.00999999977 : f32
    %50 = vector.broadcast %cst_24 : f32 to vector<1x128xf32>
    %51 = arith.mulf %50, %49 : vector<1x128xf32>
    %c1_25 = arith.constant 1 : index
    %c0_26 = arith.constant 0 : index
    %c0_27 = arith.constant 0 : index
    %52 = vector.load %arg1[%c1_25, %c0_26, %c0_27] : memref<3x128x128xf32, #tpu.memory_space<vmem>>, vector<1x128x128xf32>
    %53 = vector.shape_cast %52 : vector<1x128x128xf32> to vector<128x128xf32>
    %54 = vector.broadcast %51 : vector<1x128xf32> to vector<128x128xf32>
    %55 = arith.addf %53, %54 : vector<128x128xf32>
    %c1_28 = arith.constant 1 : index
    %c0_29 = arith.constant 0 : index
    %c0_30 = arith.constant 0 : index
    %56 = vector.load %arg4[%c1_28, %c0_29, %c0_30] : memref<3x128x128xf32, #tpu.memory_space<vmem>>, vector<1x128x128xf32>
    %57 = vector.shape_cast %56 : vector<1x128x128xf32> to vector<128x128xf32>
    %58 = vector.shape_cast %55 : vector<128x128xf32> to vector<1x128x128xf32>
    tpu.vector_store %arg4[%c1_28, %c0_29, %c0_30], %58 {strides = array<i32>} : memref<3x128x128xf32, #tpu.memory_space<vmem>>, vector<1x128x128xf32>,
    %cst_31 = arith.constant 1.000000e+00 : f32
    %59 = vector.broadcast %cst_31 : f32 to vector<1x128xf32>
    %60 = arith.cmpf ogt, %33, %59 : vector<1x128xf32>
    %61 = arith.extui %60 : vector<1x128xi1> to vector<1x128xi32>
    %62 = arith.sitofp %61 : vector<1x128xi32> to vector<1x128xf32>
    %c2 = arith.constant 2 : index
    %c0_32 = arith.constant 0 : index
    %c0_33 = arith.constant 0 : index
    %63 = vector.load %arg3[%c2, %c0_32, %c0_33] : memref<3x1x128xf32, #tpu.memory_space<vmem>>, vector<1x1x128xf32>
    %64 = vector.shape_cast %63 : vector<1x1x128xf32> to vector<1x128xf32>
    %65 = vector.shape_cast %33 : vector<1x128xf32> to vector<1x1x128xf32>
    tpu.vector_store %arg3[%c2, %c0_32, %c0_33], %65 {strides = array<i32>} : memref<3x1x128xf32, #tpu.memory_space<vmem>>, vector<1x1x128xf32>,
    %c2_34 = arith.constant 2 : index
    %c0_35 = arith.constant 0 : index
    %c0_36 = arith.constant 0 : index
    %66 = vector.load %arg2[%c2_34, %c0_35, %c0_36] : memref<3x1x128xf32, #tpu.memory_space<vmem>>, vector<1x1x128xf32>
    %67 = vector.shape_cast %66 : vector<1x1x128xf32> to vector<1x128xf32>
    %68 = vector.shape_cast %62 : vector<1x128xf32> to vector<1x1x128xf32>
    tpu.vector_store %arg2[%c2_34, %c0_35, %c0_36], %68 {strides = array<i32>} : memref<3x1x128xf32, #tpu.memory_space<vmem>>, vector<1x1x128xf32>,
    %69 = arith.subf %62, %33 : vector<1x128xf32>
    %cst_37 = arith.constant 0.000000e+00 : f32
    %70 = vector.broadcast %cst_37 : f32 to vector<1x128xf32>
    %71 = arith.cmpf ogt, %69, %70 : vector<1x128xf32>
    %72 = arith.extui %71 : vector<1x128xi1> to vector<1x128xi32>
    %73 = arith.sitofp %72 : vector<1x128xi32> to vector<1x128xf32>
    %cst_38 = arith.constant 0.000000e+00 : f32
    %74 = vector.broadcast %cst_38 : f32 to vector<1x128xf32>
    %75 = arith.cmpf olt, %69, %74 : vector<1x128xf32>
    %76 = arith.extui %75 : vector<1x128xi1> to vector<1x128xi32>
    %77 = arith.sitofp %76 : vector<1x128xi32> to vector<1x128xf32>
    %78 = arith.subf %73, %77 : vector<1x128xf32>
    %cst_39 = arith.constant 0.00999999977 : f32
    %79 = vector.broadcast %cst_39 : f32 to vector<1x128xf32>
    %80 = arith.mulf %79, %78 : vector<1x128xf32>
    %c2_40 = arith.constant 2 : index
    %c0_41 = arith.constant 0 : index
    %c0_42 = arith.constant 0 : index
    %81 = vector.load %arg1[%c2_40, %c0_41, %c0_42] : memref<3x128x128xf32, #tpu.memory_space<vmem>>, vector<1x128x128xf32>
    %82 = vector.shape_cast %81 : vector<1x128x128xf32> to vector<128x128xf32>
    %83 = vector.broadcast %80 : vector<1x128xf32> to vector<128x128xf32>
    %84 = arith.addf %82, %83 : vector<128x128xf32>
    %c2_43 = arith.constant 2 : index
    %c0_44 = arith.constant 0 : index
    %c0_45 = arith.constant 0 : index
    %85 = vector.load %arg4[%c2_43, %c0_44, %c0_45] : memref<3x128x128xf32, #tpu.memory_space<vmem>>, vector<1x128x128xf32>
    %86 = vector.shape_cast %85 : vector<1x128x128xf32> to vector<128x128xf32>
    %87 = vector.shape_cast %84 : vector<128x128xf32> to vector<1x128x128xf32>
    tpu.vector_store %arg4[%c2_43, %c0_44, %c0_45], %87 {strides = array<i32>} : memref<3x128x128xf32, #tpu.memory_space<vmem>>, vector<1x128x128xf32>,
    return
  }
}

</mosaic_0001>

<bundles_post_ra>
// kernel: spiking_network_forward.1
= control target key start
LH: loop header
LB: loop body
LE: loop exit
PB: predicated region body
PF: predicated region fallthrough
CT: control target
= control target key end

     0   :  { %v47_v1 = vlaneseq  ;;  %v353_v2 = vmov 0.0   ;;  %s354_s17 = smov [#allocation2]   ;;  %s725_s0 = inlined_call_operand.vmem [shape: f32[1,128], index: 0, kind: input, shape index: {}]   ;;  %s726_s1 = inlined_call_operand.vmem [shape: f32[3,128,128], index: 1, kind: input, shape index: {}, may-alias: {1,4}]   ;;  %s727_s2 = inlined_call_operand.vmem [shape: f32[3,1,128], index: 2, kind: output, shape index: {0}]   ;;  %s728_s3 = inlined_call_operand.hbm [shape: f32[3,1,128], index: 3, kind: output, shape index: {1}]   ;;  %s729_s4 = inlined_call_operand.vmem [shape: f32[3,128,128], index: 4, kind: output, shape index: {2}, may-alias: {1,4}]  }
   0x1   :  { %v15_v0 = vld [vmem:[%s725_s0] sm:$0x1]  ;;  %v31_v17 = vld [vmem:[%s726_s1 + $0x8] sm:$0xff]  ;;  %v32_v18 = vld [vmem:[%s726_s1 + $0x10] sm:$0xff]  ;;  %s235_s18 = sshll.u32 %s354_s17, 4  ;;  %s484_s18 = int_to_ptr.vmem [resolvable:$true] %s235_s18 }
   0x2   :  { %vm16_vm0 = vcmp.gt.f32.partialorder %v15_v0, 1.0  ;;  %19 = vst [vmem:[#allocation2] sm:$0x1] %v15_v0  ;;  %v48_v4 = vshrl.u32 %v47_v1, 7  ;;  %v30_v16 = vld [vmem:[%s726_s1] sm:$0xff]  ;;  %v33_v21 = vld [vmem:[%s726_s1 + $0x18] sm:$0xff] }
   0x3   :  { %v252_v3 = vsel %vm16_vm0, 1.0, %v353_v2  ;;  %v34_v22 = vld [vmem:[%s726_s1 + $0x20] sm:$0xff]  ;;  %v35_v23 = vld [vmem:[%s726_s1 + $0x28] sm:$0xff]  ;;  %v36_v24 = vld [vmem:[%s726_s1 + $0x30] sm:$0xff] }
   0x4   :  { %v21_v5 = vsub.f32 %v252_v3, %v15_v0  ;;  %20 = vst [vmem:[%s727_s2] sm:$0x1] %v252_v3  ;;  %88 = vst [vmem:[#allocation2 + $0x1] sm:$0x1] %v252_v3  ;;  %vm84_vm1 = vcmp.gt.f32.partialorder %v252_v3, 1.0  ;;  %v391_v10 = vsub.s32 0, %v48_v4  ;;  %v37_v25 = vld [vmem:[%s726_s1 + $0x38] sm:$0xff] }
   0x5   :  { %v255_v6 = vsel %vm84_vm1, 1.0, %v353_v2  ;;  %v38_v26 = vld [vmem:[%s726_s1 + $0x40] sm:$0xff]  ;;  %v39_v27 = vld [vmem:[%s726_s1 + $0x48] sm:$0xff]  ;;  %v40_v28 = vld [vmem:[%s726_s1 + $0x50] sm:$0xff] }
   0x6   :  { %vm22_vm2 = vcmp.gt.f32.partialorder %v21_v5, 0.0  ;;  %vm25_vm3 = vcmp.lt.f32.partialorder %v21_v5, 0.0  ;;  %v91_v7 = vsub.f32 %v255_v6, %v252_v3  ;;  %160 = vst [vmem:[#allocation2 + $0x2] sm:$0x1] %v255_v6  ;;  %256 = vst [vmem:[%s727_s2 + $0x1] sm:$0x1] %v255_v6 }
   0x7   :  { %vm156_vm4 = vcmp.gt.f32.partialorder %v255_v6, 1.0  ;;  %v253_v8 = vsel %vm22_vm2, 1.0, %v353_v2  ;;  %v254_v9 = vsel %vm25_vm3, 1.0, %v353_v2  ;;  %v41_v32 = vld [vmem:[%s726_s1 + $0x58] sm:$0xff]  ;;  %v42_v33 = vld [vmem:[%s726_s1 + $0x60] sm:$0xff]  ;;  %v43_v34 = vld [vmem:[%s726_s1 + $0x68] sm:$0xff] }
   0x8   :  { %v291_v11 = vsel %vm156_vm4, 1.0, %v353_v2  ;;  %v28_v12 = vsub.f32 %v253_v8, %v254_v9  ;;  %vm92_vm5 = vcmp.gt.f32.partialorder %v91_v7, 0.0  ;;  %vm95_vm6 = vcmp.lt.f32.partialorder %v91_v7, 0.0  ;;  %v44_v35 = vld [vmem:[%s726_s1 + $0x70] sm:$0xff]  ;;  %v45_v37 = vld [vmem:[%s726_s1 + $0x78] sm:$0xff]  ;;  %v259_v38 = vld [vmem:[%s726_s1 + $0x80] sm:$0xff] }
   0x9   :  { %292 = vst [vmem:[%s727_s2 + $0x2] sm:$0x1] %v291_v11  ;;  %v163_v13 = vsub.f32 %v291_v11, %v255_v6  ;;  %v257_v14 = vsel %vm92_vm5, 1.0, %v353_v2  ;;  %v258_v15 = vsel %vm95_vm6, 1.0, %v353_v2  ;;  %v260_v39 = vld [vmem:[%s726_s1 + $0x88] sm:$0xff]  ;;  %v261_v40 = vld [vmem:[%s726_s1 + $0x90] sm:$0xff] }
   0xa   :  { %v29_v19 = vmul.f32 0.01, %v28_v12  ;;  %v98_v20 = vsub.f32 %v257_v14, %v258_v15  ;;  %v262_v46 = vld [vmem:[%s726_s1 + $0x98] sm:$0xff]  ;;  %v263_v47 = vld [vmem:[%s726_s1 + $0xa0] sm:$0xff]  ;;  %v264_v48 = vld [vmem:[%s726_s1 + $0xa8] sm:$0xff] }
   0xb   :  { %vm164_vm7 = vcmp.gt.f32.partialorder %v163_v13, 0.0  ;;  %vm167_vm8 = vcmp.lt.f32.partialorder %v163_v13, 0.0  ;;  %v265_v49 = vld [vmem:[%s726_s1 + $0xb0] sm:$0xff]  ;;  %v266_v54 = vld [vmem:[%s726_s1 + $0xb8] sm:$0xff]  ;;  %v267_v55 = vld [vmem:[%s726_s1 + $0xc0] sm:$0xff] }
   0xc   :  { %v429_v29 = vsel %vm164_vm7, 1.0, %v353_v2  ;;  %v50_v30 = vrot.slane %v29_v19, %v391_v10  ;;  %v99_v31 = vmul.f32 0.01, %v98_v20  ;;  %v444_v36 = vsel %vm167_vm8, 1.0, %v353_v2  ;;  %v268_v56 = vld [vmem:[%s726_s1 + $0xc8] sm:$0xff] }
   0xd   :  { %v170_v41 = vsub.f32 %v429_v29, %v444_v36 }
   0xe   :  { %v461_v42 = vrot.slane %v99_v31, %v391_v10  ;;  %v52_v43 = vadd.f32 %v50_v30, %v30_v16  ;;  %v53_v44 = vadd.f32 %v50_v30, %v31_v17  ;;  %v54_v45 = vadd.f32 %v50_v30, %v32_v18 }
   0xf   :  { %v55_v50 = vadd.f32 %v50_v30, %v33_v21  ;;  %v56_v51 = vadd.f32 %v50_v30, %v34_v22  ;;  %v57_v52 = vadd.f32 %v50_v30, %v35_v23  ;;  %v58_v53 = vadd.f32 %v50_v30, %v36_v24 }
  0x10   :  { %68 = vst [vmem:[%s729_s4] sm:$0xff] %v52_v43  ;;  %69 = vst [vmem:[%s729_s4 + $0x8] sm:$0xff] %v53_v44  ;;  %v59_v57 = vadd.f32 %v50_v30, %v37_v25  ;;  %v60_v58 = vadd.f32 %v50_v30, %v38_v26  ;;  %v61_v59 = vadd.f32 %v50_v30, %v39_v27 }
  0x11   :  { %70 = vst [vmem:[%s729_s4 + $0x10] sm:$0xff] %v54_v45  ;;  %v62_v60 = vadd.f32 %v50_v30, %v40_v28  ;;  %v63_v0 = vadd.f32 %v50_v30, %v41_v32  ;;  %v64_v1 = vadd.f32 %v50_v30, %v42_v33  ;;  %v65_v2 = vadd.f32 %v50_v30, %v43_v34 }
  0x12   :  { %v66_v3 = vadd.f32 %v50_v30, %v44_v35 }
  0x18   :  { %v269_v61 = vld [vmem:[%s726_s1 + $0xd0] sm:$0xff]  ;;  %v270_v62 = vld [vmem:[%s726_s1 + $0xd8] sm:$0xff]  ;;  %v271_v63 = vld [vmem:[%s726_s1 + $0xe0] sm:$0xff] }
  0x19   :  { %71 = vst [vmem:[%s729_s4 + $0x18] sm:$0xff] %v55_v50  ;;  %72 = vst [vmem:[%s729_s4 + $0x20] sm:$0xff] %v56_v51 }
  0x1a   :  { %73 = vst [vmem:[%s729_s4 + $0x28] sm:$0xff] %v57_v52  ;;  %74 = vst [vmem:[%s729_s4 + $0x30] sm:$0xff] %v58_v53 }
  0x21   :  { %v272_v4 = vld [vmem:[%s726_s1 + $0xe8] sm:$0xff]  ;;  %v273_v5 = vld [vmem:[%s726_s1 + $0xf0] sm:$0xff] }
  0x22   :  { %10 = vsyncpa [#allocation3], 0  ;;  %75 = vst [vmem:[%s729_s4 + $0x38] sm:$0xff] %v59_v57  ;;  %v67_v6 = vadd.f32 %v50_v30, %v45_v37  ;;  %v123_v7 = vadd.f32 %v259_v38, %v461_v42  ;;  %v124_v8 = vadd.f32 %v260_v39, %v461_v42  ;;  %v125_v9 = vadd.f32 %v261_v40, %v461_v42  ;;  %s331_s26 = scalar_lea.vmem %s484_s18, 48  ;;  %s335_s27 = scalar_lea.vmem %s484_s18, 64 }
  0x23   :  { %76 = vst [vmem:[%s729_s4 + $0x40] sm:$0xff] %v60_v58  ;;  %77 = vst [vmem:[%s729_s4 + $0x48] sm:$0xff] %v61_v59  ;;  %p332_p0 = scmp.ne.s32.totalorder %s484_s18, %s331_s26  ;;  %p336_p1 = scmp.lt.s32.totalorder %s484_s18, %s484_s18 }
  0x24   :  { %78 = vst [vmem:[%s729_s4 + $0x50] sm:$0xff] %v62_v60  ;;  %p337_p2 = scmp.lt.s32.totalorder %s335_s27, %s331_s26 }
  0x26   :  { %p338_p3 = por %p337_p2, %p336_p1 }
  0x28   :  { %p339_p4 = pnand %p338_p3, %p332_p0 }
  0x2a   :  { %342 = shalt.err (!%p339_p4)
}
  0x2b   :  { %s355_s28 = smov 16   ;;  %s356_s29 = smov 1   ;;  %79 = vst [vmem:[%s729_s4 + $0x58] sm:$0xff] %v63_v0  ;;  %80 = vst [vmem:[%s729_s4 + $0x60] sm:$0xff] %v64_v1  ;;  %v126_v11 = vadd.f32 %v262_v46, %v461_v42  ;;  %v127_v12 = vadd.f32 %v263_v47, %v461_v42  ;;  %v128_v13 = vadd.f32 %v264_v48, %v461_v42  ;;  %v171_v26 = vmul.f32 0.01, %v170_v41 }
  0x2c   :  { %241 = dma.vmem_to_hbm [thread:$0]  %s484_s18, 48, %s728_s3, [#allocation3], %s355_s28, %s355_s28, %s356_s29   ;;  %v129_v14 = vadd.f32 %v265_v49, %v461_v42  ;;  %v130_v16 = vadd.f32 %v266_v54, %v461_v42  ;;  %v131_v17 = vadd.f32 %v267_v55, %v461_v42  ;;  %v132_v18 = vadd.f32 %v268_v56, %v461_v42 }
  0x2d   :  { %81 = vst [vmem:[%s729_s4 + $0x68] sm:$0xff] %v65_v2  ;;  %82 = vst [vmem:[%s729_s4 + $0x70] sm:$0xff] %v66_v3  ;;  %v133_v19 = vadd.f32 %v269_v61, %v461_v42  ;;  %v134_v20 = vadd.f32 %v270_v62, %v461_v42  ;;  %v135_v21 = vadd.f32 %v271_v63, %v461_v42 }
  0x2e   :  { %v136_v22 = vadd.f32 %v272_v4, %v461_v42  ;;  %v137_v23 = vadd.f32 %v273_v5, %v461_v42  ;;  %v193_v33 = vrot.slane %v171_v26, %v391_v10 }
  0x34   :  { %v274_v15 = vld [vmem:[%s726_s1 + $0xf8] sm:$0xff] }
  0x35   :  { %83 = vst [vmem:[%s729_s4 + $0x78] sm:$0xff] %v67_v6  ;;  %275 = vst [vmem:[%s729_s4 + $0x80] sm:$0xff] %v123_v7  ;;  %v138_v25 = vadd.f32 %v274_v15, %v461_v42 }
  0x36   :  { %276 = vst [vmem:[%s729_s4 + $0x88] sm:$0xff] %v124_v8  ;;  %277 = vst [vmem:[%s729_s4 + $0x90] sm:$0xff] %v125_v9 }
  0x37   :  { %278 = vst [vmem:[%s729_s4 + $0x98] sm:$0xff] %v126_v11  ;;  %279 = vst [vmem:[%s729_s4 + $0xa0] sm:$0xff] %v127_v12 }
  0x38   :  { %280 = vst [vmem:[%s729_s4 + $0xa8] sm:$0xff] %v128_v13  ;;  %281 = vst [vmem:[%s729_s4 + $0xb0] sm:$0xff] %v129_v14 }
  0x3f   :  { %v295_v24 = vld [vmem:[%s726_s1 + $0x100] sm:$0xff] }
  0x40   :  { %282 = vst [vmem:[%s729_s4 + $0xb8] sm:$0xff] %v130_v16  ;;  %283 = vst [vmem:[%s729_s4 + $0xc0] sm:$0xff] %v131_v17  ;;  %v195_v39 = vadd.f32 %v295_v24, %v193_v33 }
  0x41   :  { %284 = vst [vmem:[%s729_s4 + $0xc8] sm:$0xff] %v132_v18  ;;  %285 = vst [vmem:[%s729_s4 + $0xd0] sm:$0xff] %v133_v19 }
  0x48   :  { %v296_v27 = vld [vmem:[%s726_s1 + $0x108] sm:$0xff]  ;;  %v297_v28 = vld [vmem:[%s726_s1 + $0x110] sm:$0xff]  ;;  %v298_v30 = vld [vmem:[%s726_s1 + $0x118] sm:$0xff] }
  0x49   :  { %286 = vst [vmem:[%s729_s4 + $0xd8] sm:$0xff] %v134_v20  ;;  %287 = vst [vmem:[%s729_s4 + $0xe0] sm:$0xff] %v135_v21  ;;  %v196_v40 = vadd.f32 %v296_v27, %v193_v33  ;;  %v197_v41 = vadd.f32 %v297_v28, %v193_v33  ;;  %v198_v42 = vadd.f32 %v298_v30, %v193_v33 }
  0x4a   :  { %288 = vst [vmem:[%s729_s4 + $0xe8] sm:$0xff] %v136_v22  ;;  %289 = vst [vmem:[%s729_s4 + $0xf0] sm:$0xff] %v137_v23 }
  0x51   :  { %v299_v29 = vld [vmem:[%s726_s1 + $0x120] sm:$0xff]  ;;  %v300_v31 = vld [vmem:[%s726_s1 + $0x128] sm:$0xff]  ;;  %v301_v32 = vld [vmem:[%s726_s1 + $0x130] sm:$0xff] }
  0x52   :  { %290 = vst [vmem:[%s729_s4 + $0xf8] sm:$0xff] %v138_v25  ;;  %v199_v46 = vadd.f32 %v299_v29, %v193_v33  ;;  %v200_v47 = vadd.f32 %v300_v31, %v193_v33  ;;  %v201_v48 = vadd.f32 %v301_v32, %v193_v33 }
  0x59   :  { %v302_v34 = vld [vmem:[%s726_s1 + $0x138] sm:$0xff]  ;;  %v303_v35 = vld [vmem:[%s726_s1 + $0x140] sm:$0xff]  ;;  %v304_v36 = vld [vmem:[%s726_s1 + $0x148] sm:$0xff] }
  0x5a   :  { %v305_v37 = vld [vmem:[%s726_s1 + $0x150] sm:$0xff]  ;;  %v306_v10 = vld [vmem:[%s726_s1 + $0x158] sm:$0xff]  ;;  %v307_v38 = vld [vmem:[%s726_s1 + $0x160] sm:$0xff]  ;;  %v202_v49 = vadd.f32 %v302_v34, %v193_v33  ;;  %v203_v50 = vadd.f32 %v303_v35, %v193_v33  ;;  %v204_v51 = vadd.f32 %v304_v36, %v193_v33 }
  0x5b   :  { %v308_v43 = vld [vmem:[%s726_s1 + $0x168] sm:$0xff]  ;;  %v309_v44 = vld [vmem:[%s726_s1 + $0x170] sm:$0xff]  ;;  %v310_v45 = vld [vmem:[%s726_s1 + $0x178] sm:$0xff]  ;;  %v205_v52 = vadd.f32 %v305_v37, %v193_v33  ;;  %v206_v53 = vadd.f32 %v306_v10, %v193_v33  ;;  %v207_v54 = vadd.f32 %v307_v38, %v193_v33 }
  0x5c   :  { %311 = vst [vmem:[%s729_s4 + $0x100] sm:$0xff] %v195_v39  ;;  %312 = vst [vmem:[%s729_s4 + $0x108] sm:$0xff] %v196_v40  ;;  %v208_v55 = vadd.f32 %v308_v43, %v193_v33  ;;  %v209_v56 = vadd.f32 %v309_v44, %v193_v33  ;;  %v210_v57 = vadd.f32 %v310_v45, %v193_v33 }
  0x5d   :  { %313 = vst [vmem:[%s729_s4 + $0x110] sm:$0xff] %v197_v41  ;;  %314 = vst [vmem:[%s729_s4 + $0x118] sm:$0xff] %v198_v42 }
  0x5e   :  { %315 = vst [vmem:[%s729_s4 + $0x120] sm:$0xff] %v199_v46  ;;  %316 = vst [vmem:[%s729_s4 + $0x128] sm:$0xff] %v200_v47 }
  0x5f   :  { %317 = vst [vmem:[%s729_s4 + $0x130] sm:$0xff] %v201_v48  ;;  %318 = vst [vmem:[%s729_s4 + $0x138] sm:$0xff] %v202_v49 }
  0x60   :  { %319 = vst [vmem:[%s729_s4 + $0x140] sm:$0xff] %v203_v50  ;;  %320 = vst [vmem:[%s729_s4 + $0x148] sm:$0xff] %v204_v51 }
  0x61   :  { %321 = vst [vmem:[%s729_s4 + $0x150] sm:$0xff] %v205_v52  ;;  %322 = vst [vmem:[%s729_s4 + $0x158] sm:$0xff] %v206_v53 }
  0x62   :  { %323 = vst [vmem:[%s729_s4 + $0x160] sm:$0xff] %v207_v54  ;;  %324 = vst [vmem:[%s729_s4 + $0x168] sm:$0xff] %v208_v55 }
  0x63   :  { %325 = vst [vmem:[%s729_s4 + $0x170] sm:$0xff] %v209_v56  ;;  %326 = vst [vmem:[%s729_s4 + $0x178] sm:$0xff] %v210_v57 }
  0x64   :  { %351 = dma.done.wait [#allocation3], 48  }
  0x65   :  { %352 = vsyncadd [#allocation3], 4294967248 }
  0x66   :  { %251 = vsyncpa [#allocation3], 1 }

</bundles_post_ra>
